<compile_context>
chip_gen: v7x
topology: tpu7x:2x2x1
jax: 0.10.0
libtpu: 0.0.40
codegen_flags: <defaults>
</compile_context>

<pallas_src>
import functools

import numpy as np

import jax
import jax.numpy as jnp
from jax.experimental import pallas as pl
from jax.experimental.pallas import tpu as pltpu


def _round_up(x: int, m: int) -> int:
    return ((x + m - 1) // m) * m


def _spatial_grad_kernel(mask_ref, x_ref, out_ref, acc_ref, carry_ref, *,
                         d_true, w_true, tile_d, penalty,
                         scale_h, scale_d, scale_w):
    t = pl.program_id(1)

    # Zero the per-volume accumulator at the first D-tile of each (n, c).
    @pl.when(t == 0)
    def _init():
        acc_ref[...] = jnp.zeros_like(acc_ref)

    x = x_ref[...].astype(jnp.float32)          # (TD, HWp) lane-dense plane tile
    hwp = x.shape[1]

    # 0/1 lane-validity masks (precomputed host-side, see wrapper).
    w_mask = mask_ref[0:1, :]                   # (1, HWp): valid W-diff lanes
    h_mask = mask_ref[1:2, :]                   # (1, HWp): valid H-diff lanes

    # --- diff along W (torch dim 4): neighbour is lane l+1 ------------------
    xw = pltpu.roll(x, hwp - 1, axis=1)         # xw[l] = x[(l + 1) % HWp]
    dz = jnp.abs(xw - x) * w_mask

    # --- diff along H (torch dim 3): neighbour is lane l+W ------------------
    xh = pltpu.roll(x, hwp - w_true, axis=1)    # xh[l] = x[(l + W) % HWp]
    dx = jnp.abs(xh - x) * h_mask

    # --- diff along D (torch dim 2): neighbour is the previous plane --------
    # Row 0 takes the plane carried over from the previous D-tile.
    prev = pltpu.roll(x, 1, axis=0)             # prev[r] = x[r-1] (row 0 wraps)
    sub = jax.lax.broadcasted_iota(jnp.int32, x.shape, 0)
    prev = jnp.where(sub == 0, carry_ref[...], prev)
    d_glob = sub + t * tile_d
    dy = jnp.where((d_glob >= 1) & (d_glob < d_true), jnp.abs(x - prev), 0.0)

    if penalty == 'l2':
        dx = dx * dx
        dy = dy * dy
        dz = dz * dz

    # Pre-scaled (1/count) partial sums; pure VPU elementwise accumulate.
    acc_ref[...] += dx * scale_h + dy * scale_d + dz * scale_w

    # Carry the last plane of this tile for the next tile's D-diff.
    carry_ref[...] = x[tile_d - 1:tile_d, :]

    # One cross-lane reduce per (n, c) volume, only at its last D-tile.
    @pl.when(t == pl.num_programs(1) - 1)
    def _finalize():
        s = jnp.sum(acc_ref[...])
        out_ref[...] = jnp.full(out_ref.shape, s, dtype=out_ref.dtype)


def spatial_grad(y_pred, penalty='l1', loss_mult=None, *, block_d=None):
    """Pallas TPU implementation of SpatialGrad.forward. y_pred: (N, C, D, H, W)."""
    N, C, D, H, W = y_pred.shape
    NC = N * C
    HW = H * W
    HWp = _round_up(max(HW, 128), 128)          # lane-dense last dim

    # D-tile size: multiple of 8 sublanes, ~<=1 MiB per (double-buffered) block.
    if block_d is None:
        itemsize = jnp.dtype(y_pred.dtype).itemsize
        block_d = max(8, min(256, ((1 << 20) // (HWp * itemsize)) // 8 * 8))
    TD = max(8, _round_up(int(block_d), 8))
    TD = min(TD, _round_up(D, 8))
    Dp = _round_up(D, TD)
    nt = Dp // TD

    x = y_pred.reshape(NC, D, HW)
    if (Dp, HWp) != (D, HW):
        x = jnp.pad(x, ((0, 0), (0, Dp - D), (0, HWp - HW)))  # zero padding

    # Host-side 0/1 lane-validity masks (avoids integer mod on the VPU).
    lanes = np.arange(HWp)
    w_valid = ((lanes % W) != (W - 1)) & (lanes < HW)   # W-diff (torch dim 4)
    h_valid = lanes < (H - 1) * W                       # H-diff (torch dim 3)
    masks = jnp.asarray(np.stack([w_valid, h_valid]).astype(np.float32))

    # torch.mean denominators.  A zero count (degenerate D/H/W == 1) yields NaN,
    # matching the reference's mean over an empty diff.
    n_dx = N * C * D * (H - 1) * W
    n_dy = N * C * (D - 1) * H * W
    n_dz = N * C * D * H * (W - 1)
    scale_h = (1.0 / n_dx) if n_dx > 0 else float('nan')
    scale_d = (1.0 / n_dy) if n_dy > 0 else float('nan')
    scale_w = (1.0 / n_dz) if n_dz > 0 else float('nan')

    kernel = functools.partial(
        _spatial_grad_kernel, d_true=D, w_true=W, tile_d=TD, penalty=penalty,
        scale_h=scale_h, scale_d=scale_d, scale_w=scale_w)

    flops = 9 * N * C * D * H * W
    bytes_accessed = int(x.size * x.dtype.itemsize + masks.size * 4
                         + NC * 8 * 128 * 4)

    partial = pl.pallas_call(
        kernel,
        out_shape=jax.ShapeDtypeStruct((NC, 8, 128), jnp.float32),
        grid=(NC, nt),
        in_specs=[
            # Lane masks: same (full) block every step -> stays resident.
            pl.BlockSpec((2, HWp), lambda i, t: (0, 0)),
            # One (TD, HWp) D-tile of volume i per step.
            pl.BlockSpec((None, TD, HWp), lambda i, t: (i, t, 0)),
        ],
        out_specs=pl.BlockSpec((None, 8, 128), lambda i, t: (i, 0, 0)),
        scratch_shapes=[
            pltpu.VMEM((TD, HWp), jnp.float32),   # pre-scaled partial-sum accumulator
            pltpu.VMEM((1, HWp), jnp.float32),    # carried last D-plane (halo)
        ],
        compiler_params=pltpu.CompilerParams(
            dimension_semantics=("parallel", "arbitrary"),
            vmem_limit_bytes=32 * 1024 * 1024),
        cost_estimate=pl.CostEstimate(flops=flops, transcendentals=0,
                                      bytes_accessed=bytes_accessed),
    )(masks, x)

    d = jnp.sum(partial[:, 0, 0])
    grad = d / 3.0
    if loss_mult is not None:
        grad = grad * loss_mult
    return grad


def spatial_grad_ref(y_pred, penalty='l1', loss_mult=None):
    """Pure-JAX reference matching the PyTorch forward exactly."""
    dy = jnp.abs(y_pred[:, :, 1:, :, :] - y_pred[:, :, :-1, :, :])
    dx = jnp.abs(y_pred[:, :, :, 1:, :] - y_pred[:, :, :, :-1, :])
    dz = jnp.abs(y_pred[:, :, :, :, 1:] - y_pred[:, :, :, :, :-1])
    if penalty == 'l2':
        dy = dy * dy
        dx = dx * dx
        dz = dz * dz
    d = jnp.mean(dx) + jnp.mean(dy) + jnp.mean(dz)
    grad = d / 3.0
    if loss_mult is not None:
        grad = grad * loss_mult
    return grad


if __name__ == "__main__":
    key = jax.random.PRNGKey(0)
    k1, k2 = jax.random.split(key)

    # Case A: aligned shapes, single D-tile per volume.
    y1 = jax.random.normal(k1, (2, 3, 8, 16, 16), dtype=jnp.float32)
    # Case B: ragged shapes + forced multi D-tile (exercises lane/D padding and
    # the carried halo plane across D-tiles).
    y2 = jax.random.normal(k2, (1, 2, 20, 9, 14), dtype=jnp.float32)

    cases = [
        (y1, 'l1', None, None),
        (y1, 'l2', 0.5, None),
        (y2, 'l1', None, 8),
        (y2, 'l2', 2.0, 8),
    ]

    ok = True
    for y, penalty, loss_mult, block_d in cases:
        out = spatial_grad(y, penalty=penalty, loss_mult=loss_mult,
                           block_d=block_d)
        out = jax.block_until_ready(out)
        ref = spatial_grad_ref(y, penalty=penalty, loss_mult=loss_mult)
        if not jnp.allclose(out, ref, rtol=1e-4, atol=1e-6):
            ok = False
            print(f"MISMATCH shape={y.shape} penalty={penalty} "
                  f"loss_mult={loss_mult}: kernel={out} ref={ref}")

    if ok:
        print("KERNEL_OK")
</pallas_src>

<mosaic_0001>
module attributes {stable_mosaic.version = 11 : i64} {
  func.func @_spatial_grad_kernel(%arg0: i32, %arg1: i32, %arg2: memref<2x256xf32, #tpu.memory_space<vmem>>, %arg3: memref<1x8x256xf32, #tpu.memory_space<vmem>>, %arg4: memref<1x8x128xf32, #tpu.memory_space<vmem>>, %arg5: memref<8x256xf32, #tpu.memory_space<vmem>>, %arg6: memref<1x256xf32, #tpu.memory_space<vmem>>) attributes {dimension_semantics = [#tpu.dimension_semantics<parallel>, #tpu.dimension_semantics<arbitrary>], iteration_bounds = array<i64: 6, 1>, scalar_prefetch = 0 : i64, scratch_operands = 2 : i64, tpu.core_type = #tpu.core_type<tc>, window_params = [{pipeline_mode = #tpu.pipeline_mode<synchronous>, transform_indices = @transform_0, window_bounds = array<i64: 2, 256>}, {transform_indices = @transform_1, window_bounds = array<i64: 1, 8, 256>}, {transform_indices = @transform_2, window_bounds = array<i64: 1, 8, 128>}]} {
    %c0_i32 = arith.constant 0 : i32
    %0 = arith.cmpi eq, %arg1, %c0_i32 : i32
    %1 = arith.extui %0 : i1 to i32
    %c0_i32_0 = arith.constant 0 : i32
    %2 = arith.cmpi ne, %1, %c0_i32_0 : i32
    scf.if %2 {
      %cst_22 = arith.constant 0.000000e+00 : f32
      %53 = vector.broadcast %cst_22 : f32 to vector<8x256xf32>
      %c0_23 = arith.constant 0 : index
      %c0_24 = arith.constant 0 : index
      %54 = vector.load %arg5[%c0_23, %c0_24] : memref<8x256xf32, #tpu.memory_space<vmem>>, vector<8x256xf32>
      tpu.vector_store %arg5[%c0_23, %c0_24], %53 {strides = array<i32>} : memref<8x256xf32, #tpu.memory_space<vmem>>, vector<8x256xf32>,
    } else {
    }
    %c0 = arith.constant 0 : index
    %c0_1 = arith.constant 0 : index
    %c0_2 = arith.constant 0 : index
    %3 = vector.load %arg3[%c0, %c0_1, %c0_2] : memref<1x8x256xf32, #tpu.memory_space<vmem>>, vector<1x8x256xf32>
    %4 = vector.shape_cast %3 : vector<1x8x256xf32> to vector<8x256xf32>
    %c0_3 = arith.constant 0 : index
    %c0_4 = arith.constant 0 : index
    %5 = vector.load %arg2[%c0_3, %c0_4] : memref<2x256xf32, #tpu.memory_space<vmem>>, vector<1x256xf32>
    %c1 = arith.constant 1 : index
    %c0_5 = arith.constant 0 : index
    %6 = vector.load %arg2[%c1, %c0_5] : memref<2x256xf32, #tpu.memory_space<vmem>>, vector<1x256xf32>
    %c255_i32 = arith.constant 255 : i32
    %7 = tpu.dynamic_rotate %4 by %c255_i32 dim 1 : vector<8x256xf32>, i32 -> vector<8x256xf32>
    %8 = arith.subf %7, %4 : vector<8x256xf32>
    %9 = math.absf %8 : vector<8x256xf32>
    %10 = vector.broadcast %5 : vector<1x256xf32> to vector<8x256xf32>
    %11 = arith.mulf %9, %10 : vector<8x256xf32>
    %c240_i32 = arith.constant 240 : i32
    %12 = tpu.dynamic_rotate %4 by %c240_i32 dim 1 : vector<8x256xf32>, i32 -> vector<8x256xf32>
    %13 = arith.subf %12, %4 : vector<8x256xf32>
    %14 = math.absf %13 : vector<8x256xf32>
    %15 = vector.broadcast %6 : vector<1x256xf32> to vector<8x256xf32>
    %16 = arith.mulf %14, %15 : vector<8x256xf32>
    %c1_i32 = arith.constant 1 : i32
    %17 = tpu.dynamic_rotate %4 by %c1_i32 dim 0 : vector<8x256xf32>, i32 -> vector<8x256xf32>
    %18 = tpu.iota {dimensions = array<i32: 0>} : vector<8x256xi32>
    %c0_i32_6 = arith.constant 0 : i32
    %19 = vector.broadcast %c0_i32_6 : i32 to vector<8x256xi32>
    %20 = arith.cmpi eq, %18, %19 : vector<8x256xi32>
    %c0_7 = arith.constant 0 : index
    %c0_8 = arith.constant 0 : index
    %21 = vector.load %arg6[%c0_7, %c0_8] : memref<1x256xf32, #tpu.memory_space<vmem>>, vector<1x256xf32>
    %22 = vector.shape_cast %21 : vector<1x256xf32> to vector<1x256xf32>
    %23 = vector.broadcast %22 : vector<1x256xf32> to vector<8x256xf32>
    %24 = arith.select %20, %23, %17 : vector<8x256xi1>, vector<8x256xf32>
    %c8_i32 = arith.constant 8 : i32
    %25 = arith.muli %arg1, %c8_i32 : i32
    %26 = vector.broadcast %25 : i32 to vector<8x256xi32>
    %27 = arith.addi %18, %26 : vector<8x256xi32>
    %c1_i32_9 = arith.constant 1 : i32
    %28 = vector.broadcast %c1_i32_9 : i32 to vector<8x256xi32>
    %29 = arith.cmpi sge, %27, %28 : vector<8x256xi32>
    %c8_i32_10 = arith.constant 8 : i32
    %30 = vector.broadcast %c8_i32_10 : i32 to vector<8x256xi32>
    %31 = arith.cmpi slt, %27, %30 : vector<8x256xi32>
    %32 = arith.andi %29, %31 : vector<8x256xi1>
    %33 = arith.subf %4, %24 : vector<8x256xf32>
    %34 = math.absf %33 : vector<8x256xf32>
    %cst = arith.constant 0.000000e+00 : f32
    %35 = vector.broadcast %cst : f32 to vector<8x256xf32>
    %36 = arith.select %32, %34, %35 : vector<8x256xi1>, vector<8x256xf32>
    %c0_11 = arith.constant 0 : index
    %c0_12 = arith.constant 0 : index
    %37 = vector.load %arg5[%c0_11, %c0_12] : memref<8x256xf32, #tpu.memory_space<vmem>>, vector<8x256xf32>
    %cst_13 = arith.constant 8.68055576E-5 : f32
    %38 = vector.broadcast %cst_13 : f32 to vector<8x256xf32>
    %39 = arith.mulf %16, %38 : vector<8x256xf32>
    %cst_14 = arith.constant 9.30059541E-5 : f32
    %40 = vector.broadcast %cst_14 : f32 to vector<8x256xf32>
    %41 = arith.mulf %36, %40 : vector<8x256xf32>
    %42 = arith.addf %39, %41 : vector<8x256xf32>
    %cst_15 = arith.constant 8.68055576E-5 : f32
    %43 = vector.broadcast %cst_15 : f32 to vector<8x256xf32>
    %44 = arith.mulf %11, %43 : vector<8x256xf32>
    %45 = arith.addf %42, %44 : vector<8x256xf32>
    %46 = arith.addf %37, %45 : vector<8x256xf32>
    %c0_16 = arith.constant 0 : index
    %c0_17 = arith.constant 0 : index
    %47 = vector.load %arg5[%c0_16, %c0_17] : memref<8x256xf32, #tpu.memory_space<vmem>>, vector<8x256xf32>
    tpu.vector_store %arg5[%c0_16, %c0_17], %46 {strides = array<i32>} : memref<8x256xf32, #tpu.memory_space<vmem>>, vector<8x256xf32>,
    %48 = vector.extract_strided_slice %4 {offsets = [7, 0], sizes = [1, 256], strides = [1, 1]} : vector<8x256xf32> to vector<1x256xf32>
    %c0_18 = arith.constant 0 : index
    %c0_19 = arith.constant 0 : index
    %49 = vector.load %arg6[%c0_18, %c0_19] : memref<1x256xf32, #tpu.memory_space<vmem>>, vector<1x256xf32>
    tpu.vector_store %arg6[%c0_18, %c0_19], %48 {strides = array<i32>} : memref<1x256xf32, #tpu.memory_space<vmem>>, vector<1x256xf32>,
    %c0_i32_20 = arith.constant 0 : i32
    %50 = arith.cmpi eq, %arg1, %c0_i32_20 : i32
    %51 = arith.extui %50 : i1 to i32
    %c0_i32_21 = arith.constant 0 : i32
    %52 = arith.cmpi ne, %51, %c0_i32_21 : i32
    scf.if %52 {
      %c0_22 = arith.constant 0 : index
      %c0_23 = arith.constant 0 : index
      %53 = vector.load %arg5[%c0_22, %c0_23] : memref<8x256xf32, #tpu.memory_space<vmem>>, vector<8x256xf32>
      %54 = vector.shape_cast %53 : vector<8x256xf32> to vector<1x8x256xf32>
      %cst_24 = arith.constant dense<0.000000e+00> : vector<1xf32>
      %55 = vector.multi_reduction <add>, %54, %cst_24 [1, 2] : vector<1x8x256xf32> to vector<1xf32>
      %56 = vector.shape_cast %55 : vector<1xf32> to vector<1x1x1xf32>
      %57 = vector.extract %56[0, 0, 0] : f32 from vector<1x1x1xf32>
      %58 = vector.broadcast %57 : f32 to vector<8x128xf32>
      %c0_25 = arith.constant 0 : index
      %c0_26 = arith.constant 0 : index
      %c0_27 = arith.constant 0 : index
      %59 = vector.load %arg4[%c0_25, %c0_26, %c0_27] : memref<1x8x128xf32, #tpu.memory_space<vmem>>, vector<1x8x128xf32>
      %60 = vector.shape_cast %59 : vector<1x8x128xf32> to vector<8x128xf32>
      %61 = vector.shape_cast %58 : vector<8x128xf32> to vector<1x8x128xf32>
      tpu.vector_store %arg4[%c0_25, %c0_26, %c0_27], %61 {strides = array<i32>} : memref<1x8x128xf32, #tpu.memory_space<vmem>>, vector<1x8x128xf32>,
    } else {
    }
    return
  }
  func.func @transform_0(%arg0: i32, %arg1: i32) -> (i32, i32) {
    %c0_i32 = arith.constant 0 : i32
    %c0_i32_0 = arith.constant 0 : i32
    %c0_i32_1 = arith.constant 0 : i32
    return %c0_i32, %c0_i32_0 : i32, i32
  }
  func.func @transform_1(%arg0: i32, %arg1: i32) -> (i32, i32, i32) {
    %c0_i32 = arith.constant 0 : i32
    %c0_i32_0 = arith.constant 0 : i32
    return %arg0, %arg1, %c0_i32 : i32, i32, i32
  }
  func.func @transform_2(%arg0: i32, %arg1: i32) -> (i32, i32, i32) {
    %c0_i32 = arith.constant 0 : i32
    %c0_i32_0 = arith.constant 0 : i32
    %c0_i32_1 = arith.constant 0 : i32
    return %arg0, %c0_i32, %c0_i32_0 : i32, i32, i32
  }
}

</mosaic_0001>

<bundles_post_ra>
// kernel: tpu_custom_call.1
= control target key start
LH: loop header
LB: loop body
LE: loop exit
PB: predicated region body
PF: predicated region fallthrough
CT: control target
= control target key end

     0   :  { %7 = vsyncpa [#allocation5], 0  ;;  %s924_s0 = inlined_call_operand.hbm [shape: f32[2,256], index: 0, kind: input, shape index: {}]   ;;  %s925_s1 = inlined_call_operand.hbm [shape: f32[6,8,256], index: 1, kind: input, shape index: {}]   ;;  %s926_s2 = inlined_call_operand.hbm [shape: f32[6,8,128], index: 2, kind: output, shape index: {}]  }
   0x1   :  { %8 = vsyncpa [#allocation8], 0 }
   0x2   :  { %10 = vsyncpa [#allocation8 + $0x1], 0 }
   0x3   :  { %11 = vsyncpa [#allocation6], 0 }
   0x4   :  { %13 = vsyncpa [#allocation6 + $0x1], 0  ;;  %s709_s9 = smov 0   ;;  %s711_s10 = smov 0  }
   0x5   :  { %s713_s11 = smov 0   ;;  %s715_s12 = smov 0  }
   0x6   :  { %s717_s13 = smov 0   ;;  %s719_s14 = smov 0  }
   0x7 LB: > { %s446_s15 = sadd.s32 4294967295, %s686_s14   ;;  %s447_s16 = sadd.s32 4294967294, %s686_s14   ;;  %s686_s14 = sphi %s719_s14, %s19_s14   ;;  %s682_s13 = sphi %s717_s13, %s950_s13   ;;  %s678_s12 = sphi %s715_s12, %s949_s12   ;;  %s674_s11 = sphi %s713_s11, %s948_s11   ;;  %s670_s10 = sphi %s711_s10, %s947_s10   ;;  %s666_s9 = sphi %s709_s9, %s946_s9  }
   0x8   : > { %p74_p0 = scmp.ne.s32.totalorder %s670_s10, %s666_s9  ;;  %p743_p1 = scmp.eq.s32.totalorder %s446_s15, 0 }
   0x9   : > { %p747_p2 = scmp.eq.s32.totalorder %s446_s15, 5  ;;  %p104_p3 = scmp.eq.s32.totalorder %s447_s16, 5 }
   0xa   : > { %s931_s17 = scalar_select %p743_p1, 1, 0 }
   0xb   : > { %s932_s18 = scalar_select %p747_p2, 1, 0 }
   0xc   : > { %p753_p4 = por %p743_p1, %p74_p0  ;;  %p448_p5 = scmp.ge.s32.totalorder %s686_s14, 1 }
   0xd   : > { %p758_p6 = por %p104_p3, %p74_p0  ;;  %p111_p7 = scmp.lt.s32.totalorder %s686_s14, 7 }
   0xe   : > { %s933_s19 = scalar_select %p753_p4, 1, 0 }
   0xf   : > { %s934_s20 = scalar_select %p758_p6, 1, 0 }
  0x10   : > { %p763_p8 = pnand %p448_p5, %p111_p7  ;;  %s688_s22 = smov [#allocation4]  }
  0x11   : > { %s124_s23 = sshll.u32 %s688_s22, 4  ;;  %s31_s25 = sadd.s32 1, %s682_s13  ;;  %s125_s23 = int_to_ptr.vmem [resolvable:$true] %s124_s23 }
  0x12   : > { %s935_s21 = scalar_select %p763_p8, 1, 0 }
  0x13   : > { %p473_p9 = pneg %p763_p8  ;;  %s61_s26 = sadd.s32 1, %s674_s11 }
  0x14   : > { %p777_p11 = scmp.ge.s32.totalorder %s31_s25, 6  ;;  %s542_s30 = scalar_lea.hbm %s924_s0, 64 }
  0x15   : > { %p771_p10 = pnand %p473_p9, %p743_p1  ;;  %p543_p12 = scmp.ne.s32.totalorder %s924_s0, %s542_s30 }
  0x16   : > { %s937_s27 = scalar_select %p777_p11, 1, 0 }
  0x17   : > { %p544_p13 = pneg %p771_p10  ;;  %p549_p5 = scmp.lt.u32.totalorder %s542_s30, %s924_s0 }
  0x19   : > { %p545_p0 = pnand %p544_p13, %p543_p12 }
  0x1b   : > { %p546_p3 = pneg %p545_p0 }
  0x1d   : > { %p551_p7 = pnand %p549_p5, %p546_p3 }
  0x1f   : > { %554 = shalt.err (!%p551_p7)
}
  0x20   : > { %s555_s7 = scalar_lea.vmem %s125_s23, 64  ;;  %p563_p1 = scmp.lt.s32.totalorder %s125_s23, %s125_s23 }
  0x21   : > { %p556_p9 = scmp.ne.s32.totalorder %s125_s23, %s555_s7  ;;  %p564_p8 = scmp.lt.s32.totalorder %s555_s7, %s555_s7 }
  0x23   : > { %p558_p6 = pnand %p556_p9, %p544_p13  ;;  %p565_p2 = por %p564_p8, %p563_p1 }
  0x25   : > { %p559_p4 = pneg %p558_p6 }
  0x27   : > { %p566_p11 = pnand %p565_p2, %p559_p4 }
  0x29   : > { %569 = shalt.err (!%p566_p11)
}
  0x2a   : > { %476 = dma.hbm_to_vmem [thread:$0]  (!%p771_p10), %s924_s0, 64, %s125_s23, [#allocation5]  }
  0x2b   : > { %p938_p1 = scmp.ne.s32.totalorder %s937_s27, 0  ;;  %p68_p2 = scmp.ne.s32.totalorder %s674_s11, %s670_s10 }
  0x2c   : > { %p69_p4 = scmp.eq.s32.totalorder %s686_s14, 0  ;;  %p486_p6 = scmp.lt.s32.totalorder %s686_s14, 6 }
  0x2d   : > { %s952_s25 = smov (%p938_p1, %s31_s25), 0  ;;  %p939_p12 = scmp.ne.s32.totalorder %s932_s18, 0 }
  0x2e   : > { %s56_s16 = ssub.s32 %s682_s13, %s952_s25  ;;  %p70_p11 = por %p69_p4, %p68_p2 }
  0x2f   : > { %p59_p8 = scmp.eq.s32.totalorder %s56_s16, 0  ;;  %p809_p13 = por %p939_p12, %p68_p2 }
  0x30   : > { %s135_s24 = sand.u32 1, %s674_s11   ;;  %s462_s27 = sshll.u32 %s682_s13, 8 }
  0x31   : > { %s817_s28 = scalar_select %p59_p8, %s674_s11, %s61_s26  }
  0x32   : > { %s451_s23 = sshll.u32 %s135_s24, 4  ;;  %s823_s3 = scalar_lea.hbm %s925_s1, %s462_s27 }
  0x33   : > { %s139_s18 = scalar_lea.vmem [#allocation7], %s451_s23  ;;  %p827_p10 = pnand %p486_p6, %p70_p11 }
  0x34   : > { %s149_s4 = sshll.u32 %s139_s18, 4  ;;  %s136_s26 = scalar_lea.sflag [#allocation8], %s135_s24  ;;  %s825_s4 = int_to_ptr.vmem [resolvable:$true] %s149_s4 }
  0x35   : > { %s570_s6 = scalar_lea.hbm %s823_s3, 256  ;;  %p572_p3 = pneg %p827_p10 }
  0x36   : > { %p571_p0 = scmp.ne.s32.totalorder %s823_s3, %s570_s6  ;;  %s575_s15 = scalar_lea.hbm %s925_s1, 1536 }
  0x37   : > { %p576_p9 = scmp.lt.u32.totalorder %s823_s3, %s925_s1  ;;  %p577_p1 = scmp.lt.u32.totalorder %s575_s15, %s570_s6 }
  0x38   : > { %p573_p5 = pnand %p572_p3, %p571_p0  ;;  %p579_p4 = scmp.lt.u32.totalorder %s570_s6, %s823_s3 }
  0x39   : > { %p578_p2 = por %p577_p1, %p576_p9 }
  0x3a   : > { %p574_p7 = pneg %p573_p5 }
  0x3b   : > { %p580_p6 = por %p579_p4, %p578_p2 }
  0x3d   : > { %p581_p8 = pnand %p580_p6, %p574_p7 }
  0x3f   : > { %584 = shalt.err (!%p581_p8)
}
  0x40   : > { %s585_s24 = scalar_lea.vmem %s825_s4, 256  ;;  %s689_s27 = smov [#allocation7]  }
  0x41   : > { %p586_p11 = scmp.ne.s32.totalorder %s825_s4, %s585_s24  ;;  %s590_s29 = sshll.u32 %s689_s27, 4  ;;  %s591_s29 = int_to_ptr.vmem [resolvable:$false] %s590_s29 }
  0x42   : > { %s592_s30 = scalar_lea.vmem %s591_s29, 512  ;;  %p593_p5 = scmp.lt.s32.totalorder %s825_s4, %s591_s29 }
  0x43   : > { %p588_p12 = pnand %p586_p11, %p572_p3  ;;  %p594_p9 = scmp.lt.s32.totalorder %s592_s30, %s585_s24 }
  0x45   : > { %p589_p0 = pneg %p588_p12  ;;  %p595_p1 = por %p594_p9, %p593_p5 }
  0x47   : > { %p596_p2 = pnand %p595_p1, %p589_p0 }
  0x49   : > { %599 = shalt.err (!%p596_p2)
}
  0x4a   : > { %480 = dma.hbm_to_vmem [thread:$0]  (!%p827_p10), %s823_s3, 256, %s825_s4, %s136_s26  }
  0x4b   : > { %p942_p7 = scmp.ne.s32.totalorder %s935_s21, 0 }
  0x4c   : > { %p943_p3 = scmp.ne.s32.totalorder (!%p942_p7), %s931_s17, 0 }
  0x4d   : > { %158 = sbr.rel (%p942_p7) target bundleno = 444 (0x1bc), region = 28 }
  0x54   : > { %653 = dma.done.wait (%p943_p3), [#allocation5], 64  }
  0x55   : > { %655 = vsyncadd (%p943_p3), [#allocation5], 4294967232  ;;  %s863_s18 = sand.u32 1, %s670_s10   ;;  %p944_p4 = scmp.ne.s32.totalorder %s933_s19, 0 }
  0x56   : > { %s456_s6 = sshll.u32 %s863_s18, 4  ;;  %s165_s5 = scalar_lea.sflag [#allocation8], %s863_s18 }
  0x57   : > { %s168_s7 = scalar_lea.vmem [#allocation7], %s456_s6 }
  0x58   : > { %657 = dma.done.wait (%p944_p4), %s165_s5, 256  }
  0x59   : > { %659 = vsyncadd (%p944_p4), %s165_s5, 4294967040  ;;  %v204_v0 = vlaneseq  ;;  %v690_v1 = vmov 1966171168   ;;  %v195_v8 = vld [vmem:[%s168_s7] sm:$0xff]  ;;  %v196_v9 = vld [vmem:[%s168_s7 + $0x8] sm:$0xff]  ;;  %s691_s17 = smov 127  }
  0x5a   : > { %v301_v2 = vunpack.c.l.s4 %v690_v1  ;;  %200 = vrot.lane.b32.xlu1 %v195_v8, %s691_s17  ;;  %s692_s21 = smov 112   ;;  %v299_v10 = vcombine.high %v195_v8, %v196_v9  ;;  %v255_v11 = vld [vmem:[#allocation3] sm:$0x3]  ;;  %v250_v12 = vrot.slane %v195_v8, 7  ;;  %v251_v13 = vrot.slane %v196_v9, 7  ;;  %s457_s19 = sshll.u32 %s863_s18, 3 }
  0x5b   : > { %v215_v3 = vshrl.u32 %v204_v0, 7  ;;  %226 = vrot.lane.b32.xlu0 %v195_v8, %s692_s21  ;;  %vm319_vm2 = vcmp.lt.s32.totalorder %v204_v0, 256  ;;  %v205_v28 = vand.u32 127, %v204_v0  ;;  %v197_v31 = vld [vmem:[#allocation4] ss:$2 sm:$0x3] }
  0x5c   : > { %v302_v4 = vunpack.c.0.s8 %v301_v2  ;;  %v199_v32 = vld [vmem:[#allocation4 + $0x1] ss:$2 sm:$0x3]  ;;  %s188_s3 = scalar_lea.vmem [#allocation9], %s457_s19  ;;  %s459_s26 = sshll.u32 %s678_s12, 7 }
  0x5d   : > { %v216_v5 = vsub.s32 0, %v215_v3  ;;  %v220_v6 = vsub.s32 1, %v215_v3  ;;  %vm254_vm0 = vcmp.eq.s32.totalorder %v215_v3, 0  ;;  %vm272_vm1 = vcmp.ge.s32.totalorder %v215_v3, 1  ;;  %s353_s4 = sshll.u32 %s188_s3, 4  ;;  %s878_s23 = scalar_lea.hbm %s926_s2, %s459_s26  ;;  %s873_s4 = int_to_ptr.vmem [resolvable:$true] %s353_s4 }
  0x5e   : > { %v305_v7 = vsub.s32 %v302_v4, %v215_v3  ;;  %202 = vrot.lane.b32.xlu1 %v196_v9, %s691_s17  ;;  %vm206_vm3 = vcmp.lt.s32.totalorder %v205_v28, 127  ;;  %vm230_vm4 = vcmp.lt.s32.totalorder %v205_v28, 112  ;;  %s340_s24 = scalar_lea.sflag [#allocation6], %s863_s18  ;;  %s600_s27 = scalar_lea.vmem %s873_s4, 128 }
  0x5f   : > { %v260_v14 = vrot.slane %v255_v11, %v216_v5  ;;  %v264_v16 = vrot.slane %v255_v11, %v220_v6  ;;  %228 = vrot.lane.b32.xlu0 %v196_v9, %s692_s21  ;;  %v217_v33 = vrot.slane %v197_v31, %v216_v5  ;;  %v221_v34 = vrot.slane %v197_v31, %v220_v6  ;;  %p601_p10 = scmp.ne.s32.totalorder %s873_s4, %s600_s27  ;;  %s693_s12 = smov [#allocation9]  }
  0x60   : > { %v306_v15 = vrot.slane %v299_v10, %v305_v7  ;;  %v241_v36 = vrot.slane %v199_v32, %v216_v5  ;;  %v245_v46 = vrot.slane %v199_v32, %v220_v6  ;;  %s604_s29 = sshll.u32 %s693_s12, 4  ;;  %s605_s29 = int_to_ptr.vmem [resolvable:$false] %s604_s29 }
  0x61   : > { %v267_v17 = vsel %vm254_vm0, %v260_v14, %v250_v12  ;;  %v268_v19 = vsel %vm254_vm0, %v264_v16, %v251_v13  ;;  %p602_p6 = pnand %p601_p10, %p809_p13  ;;  %s606_s30 = scalar_lea.vmem %s605_s29, 256 }
  0x62   : > { %v307_v18 = vcombine.high %v306_v15, %v306_v15  ;;  %v275_v20 = vsub.f32 %v195_v8, %v267_v17  ;;  %v276_v21 = vsub.f32 %v196_v9, %v268_v19  ;;  %p607_p11 = scmp.lt.s32.totalorder %s873_s4, %s605_s29  ;;  %p608_p12 = scmp.lt.s32.totalorder %s606_s30, %s600_s27 }
  0x63   : > { %p603_p8 = pneg %p602_p6 }
  0x64   : > { %v314_v22 = vrot.slane %v307_v18, %v305_v7  ;;  %v277_v23 = vand.u32 2147483647, %v275_v20  ;;  %v278_v24 = vand.u32 2147483647, %v276_v21  ;;  %p609_p0 = por %p608_p12, %p607_p11 }
  0x66   : > { %v315_v25 = vcombine.high %v314_v22, %v314_v22  ;;  %v279_v26 = vsel %vm272_vm1, %v277_v23, 0.0  ;;  %v280_v27 = vsel %vm272_vm1, %v278_v24, 0.0  ;;  %p610_p5 = pnand %p609_p0, %p603_p8 }
  0x67   : > { %v285_v54 = vmul.f32 9.3005954e-05, %v279_v26  ;;  %v286_v56 = vmul.f32 9.3005954e-05, %v280_v27 }
  0x68   : > { %321 = vst.msk [vmem:[#allocation3] sm:$0x3] %vm319_vm2, %v315_v25 }
  0xcc   : > { %v201_v29 = vpop.permute.xlu1 %200 }
  0xcd   : > { %v227_v30 = vpop.permute.xlu0 %226 }
  0xd0   : > { %v203_v35 = vpop.permute.xlu1 %202 }
  0xd1   : > { %v229_v37 = vpop.permute.xlu0 %228  ;;  %v207_v38 = vsel %vm206_vm3, %v201_v29, %v203_v35  ;;  %v208_v39 = vsel %vm206_vm3, %v203_v35, %v201_v29 }
  0xd2   : > { %v231_v40 = vsel %vm230_vm4, %v227_v30, %v229_v37  ;;  %v232_v41 = vsel %vm230_vm4, %v229_v37, %v227_v30  ;;  %v209_v42 = vsub.f32 %v207_v38, %v195_v8  ;;  %v210_v43 = vsub.f32 %v208_v39, %v196_v9 }
  0xd3   : > { %v233_v44 = vsub.f32 %v231_v40, %v195_v8  ;;  %v234_v45 = vsub.f32 %v232_v41, %v196_v9 }
  0xd4   : > { %v211_v47 = vand.u32 2147483647, %v209_v42  ;;  %v212_v48 = vand.u32 2147483647, %v210_v43 }
  0xd5   : > { %v235_v49 = vand.u32 2147483647, %v233_v44  ;;  %v236_v50 = vand.u32 2147483647, %v234_v45 }
  0xd6   : > { %v224_v51 = vmul.f32 %v217_v33, %v211_v47  ;;  %v225_v52 = vmul.f32 %v221_v34, %v212_v48 }
  0xd7   : > { %v248_v53 = vmul.f32 %v241_v36, %v235_v49  ;;  %v249_v55 = vmul.f32 %v245_v46, %v236_v50 }
  0xd8   : > { %v289_v60 = vmul.f32 8.680556e-05, %v224_v51  ;;  %v290_v62 = vmul.f32 8.680556e-05, %v225_v52 }
  0xd9   : > { %v283_v57 = vmul.f32 8.680556e-05, %v248_v53  ;;  %v284_v58 = vmul.f32 8.680556e-05, %v249_v55 }
  0xdb   : > { %v287_v59 = vadd.f32 %v285_v54, %v283_v57  ;;  %v288_v61 = vadd.f32 %v286_v56, %v284_v58 }
  0xdd   : > { %v291_v63 = vadd.f32 %v289_v60, %v287_v59  ;;  %v292_v0 = vadd.f32 %v290_v62, %v288_v61 }
  0xdf   : > { %v327_v1 = vadd.f32 %v292_v0, %v291_v63 }
  0xe1   : > { %328 = vadd.xlane.f32.xlu0 %v327_v1 }
 0x16e   : > { %v329_v2 = vpop.xlane.xlu0 %328 }
 0x16f   : > { %v330_v3 = vrot.slane %v329_v2, 4 }
 0x171   : > { %v331_v4 = vadd.f32 %v330_v3, %v329_v2 }
 0x173   : > { %v332_v5 = vrot.slane %v331_v4, 2 }
 0x175   : > { %v333_v6 = vadd.f32 %v332_v5, %v331_v4 }
 0x177   : > { %v334_v7 = vrot.slane %v333_v6, 1 }
 0x179   : > { %v335_v8 = vadd.f32 %v334_v7, %v333_v6 }
 0x17b   : > { %463 = vpush %v335_v8 }
 0x1ac   : > { %s464_s8 = spop %463 }
 0x1ad   : > { %v337_v9 = vstv %s464_s8 }
 0x1ae   : > { %338 = vst [vmem:[%s188_s3] sm:$0xff] %v337_v9 }
 0x1af   : > { %613 = shalt.err (!%p610_p5)
}
 0x1b0   : > { %s614_s18 = scalar_lea.hbm %s878_s23, 128  ;;  %s618_s7 = scalar_lea.hbm %s926_s2, 768 }
 0x1b1   : > { %p615_p9 = scmp.ne.s32.totalorder %s878_s23, %s614_s18  ;;  %p619_p7 = scmp.lt.u32.totalorder %s878_s23, %s926_s2 }
 0x1b2   : > { %p620_p3 = scmp.lt.u32.totalorder %s618_s7, %s614_s18  ;;  %p622_p10 = scmp.lt.u32.totalorder %s614_s18, %s878_s23 }
 0x1b3   : > { %p616_p1 = pnand %p615_p9, %p809_p13 }
 0x1b4   : > { %p621_p4 = por %p620_p3, %p619_p7 }
 0x1b5   : > { %p617_p2 = pneg %p616_p1 }
 0x1b6   : > { %p623_p6 = por %p622_p10, %p621_p4 }
 0x1b8   : > { %p624_p8 = pnand %p623_p6, %p617_p2 }
 0x1ba   : > { %627 = shalt.err (!%p624_p8)
}
 0x1bb   : > { %471 = dma.vmem_to_hbm [thread:$0]  (%p809_p13), %s873_s4, 128, %s878_s23, %s340_s24  }
 0x1bc PF: > { %p488_p11 = scmp.ge.s32.totalorder %s686_s14, 2  ;;  %s365_s19 = sand.u32 1, %s666_s9  }
 0x1bd   : > { %p945_p12 = scmp.ne.s32.totalorder %s934_s20, 0  ;;  %s366_s3 = scalar_lea.sflag [#allocation6], %s365_s19 }
 0x1bf   : > { %p482_p0 = pnand %p488_p11, %p945_p12 }
 0x1c1   : > { %661 = dma.done.wait (!%p482_p0), %s366_s3, 128  }
 0x1c2   : > { %663 = vsyncadd (!%p482_p0), %s366_s3, 4294967168  ;;  %s19_s14 = sadd.s32 1, %s686_s14   ;;  %s946_s9 = smov %s670_s10 }
 0x1c3   : > { %p16_p5 = scmp.ge.s32.totalorder %s19_s14, 8   ;;  %s947_s10 = smov %s674_s11 }
 0x1c4   : > { %s948_s11 = smov %s817_s28  ;;  %s949_s12 = smov %s682_s13 }
 0x1c5   : > { %s950_s13 = smov %s952_s25  ;;  %18 = sbr.rel (!%p16_p5) target bundleno = 7 (0x7), region = 87 }
 0x1cc   :  { %371 = vsyncpa [#allocation5], 1 }
 0x1cd   :  { %373 = vsyncpa [#allocation5 + $0x1], 1 }
 0x1ce   :  { %374 = vsyncpa [#allocation8], 1 }
 0x1cf   :  { %376 = vsyncpa [#allocation8 + $0x1], 1 }
 0x1d0   :  { %377 = vsyncpa [#allocation6], 1 }
 0x1d1   :  { %379 = vsyncpa [#allocation6 + $0x1], 1 }

</bundles_post_ra>
